<compile_context>
chip_gen: v7x
topology: tpu7x:2x2x1
jax: 0.10.0
libtpu: 0.0.40
codegen_flags: <defaults>
</compile_context>

<pallas_src>
import math
import functools

import jax
import jax.numpy as jnp
from jax import lax
from jax.experimental import pallas as pl
from jax.experimental.pallas import tpu as pltpu


# ----------------------------------------------------------------------------
# Tiling helpers
# ----------------------------------------------------------------------------
def _tile(dim, desired, align):
    """Largest multiple of `align` that divides `dim` and is <= desired.
    Falls back to the full dim (always a legal block size)."""
    if dim <= desired:
        return dim
    t = (desired // align) * align
    while t >= align:
        if dim % t == 0:
            return t
        t -= align
    return dim


def _default_linear_tiles():
    """v5e prefers 128-wide tiles (4x128x128 MXU, 1 vst slot); v6e/v7x 256."""
    try:
        kind = jax.devices()[0].device_kind.lower()
    except Exception:  # pragma: no cover
        kind = ""
    if "v5 lite" in kind or "v5e" in kind:
        return 128, 128, 512
    return 256, 256, 512


# ----------------------------------------------------------------------------
# Kernel 1: grouped / tiled linear   y[g] = x[g] @ w[g] + b[g]
#   x: (G, M, K)   w: (G, K, N) (already transposed to K-major)   b: (G, 1, N)
#   Grid = (G, M/tm, N/tn, K/tk); K is the innermost (reduction) axis.
# ----------------------------------------------------------------------------
def _linear_kernel(x_ref, w_ref, b_ref, o_ref, acc_ref, *, k_axis):
    k = pl.program_id(k_axis)

    @pl.when(k == 0)
    def _():
        acc_ref[...] = jnp.zeros_like(acc_ref)

    acc_ref[...] += jnp.dot(x_ref[...], w_ref[...],
                            preferred_element_type=jnp.float32)

    @pl.when(k == pl.num_programs(k_axis) - 1)
    def _():
        # Bias added only on the final K step (hoisted out of the reduction).
        o_ref[...] = (acc_ref[...]
                      + b_ref[...].astype(jnp.float32)).astype(o_ref.dtype)


def pallas_linear(x, w_t, b, *, tm=None, tn=None, tk=None):
    """x: (M, K) or (G, M, K); w_t: (K, N) or (G, K, N); b: (N,) or (G, N)."""
    grouped = (x.ndim == 3)
    if not grouped:
        x, w_t, b = x[None], w_t[None], b[None]
    G, M, K = x.shape
    _, _, N = w_t.shape
    b = b.reshape(G, 1, N)

    dtm, dtn, dtk = _default_linear_tiles()
    tm = _tile(M, tm or dtm, 8)     # sublane-aligned (or full M)
    tn = _tile(N, tn or dtn, 128)   # lane-aligned   (or full N)
    tk = _tile(K, tk or dtk, 128)   # lane-aligned   (or full K)
    grid = (G, M // tm, N // tn, K // tk)

    kernel = functools.partial(_linear_kernel, k_axis=3)
    out = pl.pallas_call(
        kernel,
        out_shape=jax.ShapeDtypeStruct((G, M, N), x.dtype),
        grid_spec=pltpu.PrefetchScalarGridSpec(
            num_scalar_prefetch=0,
            grid=grid,
            in_specs=[
                pl.BlockSpec((None, tm, tk), lambda g, i, j, k: (g, i, k)),
                pl.BlockSpec((None, tk, tn), lambda g, i, j, k: (g, k, j)),
                pl.BlockSpec((None, 1, tn), lambda g, i, j, k: (g, 0, j)),
            ],
            out_specs=pl.BlockSpec((None, tm, tn), lambda g, i, j, k: (g, i, j)),
            scratch_shapes=[pltpu.VMEM((tm, tn), jnp.float32)],
        ),
        compiler_params=pltpu.CompilerParams(
            dimension_semantics=("parallel", "parallel", "parallel",
                                 "arbitrary")),
    )(x, w_t, b)
    return out if grouped else out[0]


# ----------------------------------------------------------------------------
# Kernel 2: scaled-dot-product attention over a block of heads of one batch.
#   scores = Q K^T / sqrt(d);  attn = softmax(scores);  out = attn V
# ----------------------------------------------------------------------------
def _sdpa_kernel(q_ref, k_ref, v_ref, o_ref, aw_ref, *, scale):
    q = q_ref[...]            # (Hblk, S, d)  -- input dtype, MXU handles it
    k = k_ref[...]
    v = v_ref[...]

    scores = jnp.einsum('hqd,hkd->hqk', q, k,
                        preferred_element_type=jnp.float32) * scale
    # TODO(synk): optional `mask` argument of the PyTorch forward is not wired
    # into the kernel (default mask=None path only).

    m = jnp.max(scores, axis=-1, keepdims=True)
    p = jnp.exp(scores - m)
    denom = jnp.sum(p, axis=-1, keepdims=True)
    attn = p / denom          # exact, to match F.softmax closely

    out = jnp.einsum('hqk,hkd->hqd', attn.astype(v.dtype), v,
                     preferred_element_type=jnp.float32)

    o_ref[...] = out.astype(o_ref.dtype)
    aw_ref[...] = attn.astype(aw_ref.dtype)


def _pick_h_block(H, S, d, itemsize, budget_bytes=8 * 1024 * 1024):
    """Heads per grid step such that the per-step blocks stay well under the
    default scoped-VMEM limit even with double buffering."""
    per_head = 4 * S * d * itemsize + S * S * 4   # q,k,v,out + f32 attn tile
    hb = max(1, min(H, budget_bytes // max(per_head, 1)))
    while H % hb:
        hb -= 1
    return hb


def pallas_sdpa(Q, K, V, d_head):
    B, H, S, d = Q.shape
    scale = 1.0 / math.sqrt(d_head)
    h_block = _pick_h_block(H, S, d, Q.dtype.itemsize)
    kernel = functools.partial(_sdpa_kernel, scale=scale)

    qkv_spec = pl.BlockSpec((None, h_block, S, d), lambda b, h: (b, h, 0, 0))
    out, attn_w = pl.pallas_call(
        kernel,
        out_shape=(
            jax.ShapeDtypeStruct((B, H, S, d), Q.dtype),
            # TODO(synk): for long S with attn_w unneeded, a flash-style
            # KV-tiled online-softmax path would avoid the (S,S) block; the
            # PyTorch module always returns attention_weights, so keep it.
            jax.ShapeDtypeStruct((B, H, S, S), jnp.float32),
        ),
        grid_spec=pltpu.PrefetchScalarGridSpec(
            num_scalar_prefetch=0,
            grid=(B, H // h_block),
            in_specs=[qkv_spec, qkv_spec, qkv_spec],
            out_specs=[
                pl.BlockSpec((None, h_block, S, d), lambda b, h: (b, h, 0, 0)),
                pl.BlockSpec((None, h_block, S, S), lambda b, h: (b, h, 0, 0)),
            ],
        ),
        compiler_params=pltpu.CompilerParams(
            dimension_semantics=("parallel", "parallel")),
    )(Q, K, V)
    return out, attn_w


# ----------------------------------------------------------------------------
# Parameter preparation (one-time): transpose + fuse Q/K/V weights.
# ----------------------------------------------------------------------------
def prepare_params(params):
    return {
        # (3, d_model, d_model): per-projection weights, already K-major.
        "w_qkv": jnp.stack([params["wq"].T, params["wk"].T, params["wv"].T]),
        "b_qkv": jnp.stack([params["bq"], params["bk"], params["bv"]]),
        "w_o": params["wo"].T,          # (d_model, d_model) K-major
        "b_o": params["bo"],
    }


# ----------------------------------------------------------------------------
# Full MultiHeadAttention forward (mirrors the PyTorch module)
# ----------------------------------------------------------------------------
def multi_head_attention(prep, pre_q, pre_k, pre_v, mask=None, *, num_heads):
    assert mask is None  # TODO(synk): optional attention mask not implemented.
    B, S, d_model = pre_q.shape
    d = d_model // num_heads
    M = B * S

    # Fused Q/K/V projection: single pallas_call over a leading G=3 group axis
    # (also correct for cross-attention where pre_q/k/v differ).
    x_stack = jnp.stack([pre_q.reshape(M, d_model),
                         pre_k.reshape(M, d_model),
                         pre_v.reshape(M, d_model)])           # (3, M, d_model)
    qkv = pallas_linear(x_stack, prep["w_qkv"], prep["b_qkv"])  # (3, M, d_model)

    # Exact PyTorch reshape semantics: (B, S, d_model) -> (B, H, -1, d).
    Q = qkv[0].reshape(B, num_heads, -1, d)
    K = qkv[1].reshape(B, num_heads, -1, d)
    V = qkv[2].reshape(B, num_heads, -1, d)

    out, attn_w = pallas_sdpa(Q, K, V, d)

    # (B, H, S', d) -> (B, -1, d_model) (pure reshape), then output projection.
    out2d = out.reshape(-1, d_model)
    proj = pallas_linear(out2d, prep["w_o"], prep["b_o"]).reshape(B, -1, d_model)
    # TODO(synk): nn.Dropout(0.3) is identity in eval mode; training-mode
    # dropout (torch RNG) is not reproduced.
    return proj, attn_w


# ----------------------------------------------------------------------------
# Plain-JAX reference (for a tolerance self-check)
# ----------------------------------------------------------------------------
def _reference(params, pre_q, pre_k, pre_v, *, num_heads):
    B, S, d_model = pre_q.shape
    d = d_model // num_heads
    hp = lax.Precision.HIGHEST

    def lin(x, w, b):
        return jnp.einsum('md,nd->mn', x.reshape(-1, d_model), w,
                          precision=hp) + b

    Q = lin(pre_q, params["wq"], params["bq"]).reshape(B, num_heads, -1, d)
    K = lin(pre_k, params["wk"], params["bk"]).reshape(B, num_heads, -1, d)
    V = lin(pre_v, params["wv"], params["bv"]).reshape(B, num_heads, -1, d)
    scores = jnp.einsum('bhqd,bhkd->bhqk', Q, K, precision=hp) / math.sqrt(d)
    attn = jax.nn.softmax(scores, axis=-1)
    out = jnp.einsum('bhqk,bhkd->bhqd', attn, V, precision=hp)
    out = out.reshape(B, -1, d_model)
    proj = (jnp.einsum('bsd,nd->bsn', out, params["wo"], precision=hp)
            + params["bo"])
    return proj, attn


# ----------------------------------------------------------------------------
# Deterministic parameter init + demo run
# ----------------------------------------------------------------------------
def init_params(key, d_model):
    ks = jax.random.split(key, 8)
    bound = 1.0 / math.sqrt(d_model)
    def w(k): return jax.random.uniform(k, (d_model, d_model), jnp.float32,
                                        -bound, bound)
    def b(k): return jax.random.uniform(k, (d_model,), jnp.float32,
                                        -bound, bound)
    return {
        "wq": w(ks[0]), "bq": b(ks[1]),
        "wk": w(ks[2]), "bk": b(ks[3]),
        "wv": w(ks[4]), "bv": b(ks[5]),
        "wo": w(ks[6]), "bo": b(ks[7]),
    }


if __name__ == "__main__":
    d_model, num_heads = 4, 2
    B, S = 2, 8

    key = jax.random.PRNGKey(0)
    kp, kq, kk, kv = jax.random.split(key, 4)
    params = init_params(kp, d_model)
    prep = prepare_params(params)

    pre_q = jax.random.normal(kq, (B, S, d_model), jnp.float32)
    pre_k = jax.random.normal(kk, (B, S, d_model), jnp.float32)
    pre_v = jax.random.normal(kv, (B, S, d_model), jnp.float32)

    proj, attn_w = multi_head_attention(prep, pre_q, pre_k, pre_v,
                                        num_heads=num_heads)
    jax.block_until_ready((proj, attn_w))

    assert proj.shape == (B, S, d_model)
    assert attn_w.shape == (B, num_heads, S, S)

    ref_proj, ref_attn = _reference(params, pre_q, pre_k, pre_v,
                                    num_heads=num_heads)
    assert jnp.allclose(proj, ref_proj, rtol=1e-3, atol=1e-3)
    assert jnp.allclose(attn_w, ref_attn, rtol=1e-3, atol=1e-3)

    print("KERNEL_OK")
</pallas_src>

<mosaic_0001>
module attributes {stable_mosaic.version = 11 : i64} {
  func.func @_linear_kernel(%arg0: i32, %arg1: i32, %arg2: i32, %arg3: i32, %arg4: memref<1x16x4xf32, #tpu.memory_space<vmem>>, %arg5: memref<1x4x4xf32, #tpu.memory_space<vmem>>, %arg6: memref<1x1x4xf32, #tpu.memory_space<vmem>>, %arg7: memref<1x16x4xf32, #tpu.memory_space<vmem>>, %arg8: memref<16x4xf32, #tpu.memory_space<vmem>>) attributes {dimension_semantics = [#tpu.dimension_semantics<parallel>, #tpu.dimension_semantics<parallel>, #tpu.dimension_semantics<parallel>, #tpu.dimension_semantics<arbitrary>], iteration_bounds = array<i64: 3, 1, 1, 1>, scalar_prefetch = 0 : i64, scratch_operands = 1 : i64, tpu.core_type = #tpu.core_type<tc>, window_params = [{transform_indices = @transform_0, window_bounds = array<i64: 1, 16, 4>}, {transform_indices = @transform_1, window_bounds = array<i64: 1, 4, 4>}, {transform_indices = @transform_2, window_bounds = array<i64: 1, 1, 4>}, {transform_indices = @transform_3, window_bounds = array<i64: 1, 16, 4>}]} {
    %c0_i32 = arith.constant 0 : i32
    %0 = arith.cmpi eq, %arg3, %c0_i32 : i32
    %1 = arith.extui %0 : i1 to i32
    %c0_i32_0 = arith.constant 0 : i32
    %2 = arith.cmpi ne, %1, %c0_i32_0 : i32
    scf.if %2 {
      %cst_12 = arith.constant 0.000000e+00 : f32
      %14 = vector.broadcast %cst_12 : f32 to vector<16x4xf32>
      %c0_13 = arith.constant 0 : index
      %c0_14 = arith.constant 0 : index
      %15 = vector.load %arg8[%c0_13, %c0_14] : memref<16x4xf32, #tpu.memory_space<vmem>>, vector<16x4xf32>
      tpu.vector_store %arg8[%c0_13, %c0_14], %14 {strides = array<i32>} : memref<16x4xf32, #tpu.memory_space<vmem>>, vector<16x4xf32>,
    } else {
    }
    %c0 = arith.constant 0 : index
    %c0_1 = arith.constant 0 : index
    %3 = vector.load %arg8[%c0, %c0_1] : memref<16x4xf32, #tpu.memory_space<vmem>>, vector<16x4xf32>
    %c0_2 = arith.constant 0 : index
    %c0_3 = arith.constant 0 : index
    %c0_4 = arith.constant 0 : index
    %4 = vector.load %arg4[%c0_2, %c0_3, %c0_4] : memref<1x16x4xf32, #tpu.memory_space<vmem>>, vector<1x16x4xf32>
    %5 = vector.shape_cast %4 : vector<1x16x4xf32> to vector<16x4xf32>
    %c0_5 = arith.constant 0 : index
    %c0_6 = arith.constant 0 : index
    %c0_7 = arith.constant 0 : index
    %6 = vector.load %arg5[%c0_5, %c0_6, %c0_7] : memref<1x4x4xf32, #tpu.memory_space<vmem>>, vector<1x4x4xf32>
    %7 = vector.shape_cast %6 : vector<1x4x4xf32> to vector<4x4xf32>
    %cst = arith.constant dense<0.000000e+00> : vector<16x4xf32>
    %8 = tpu.matmul %5, %7, %cst {dimension_numbers = #tpu.dot_dimension_numbers<[1], [0], [0], [1], [0, 0, 1, 1], [], []>} : vector<16x4xf32>, vector<4x4xf32>, vector<16x4xf32> -> vector<16x4xf32>
    %9 = arith.addf %3, %8 : vector<16x4xf32>
    %c0_8 = arith.constant 0 : index
    %c0_9 = arith.constant 0 : index
    %10 = vector.load %arg8[%c0_8, %c0_9] : memref<16x4xf32, #tpu.memory_space<vmem>>, vector<16x4xf32>
    tpu.vector_store %arg8[%c0_8, %c0_9], %9 {strides = array<i32>} : memref<16x4xf32, #tpu.memory_space<vmem>>, vector<16x4xf32>,
    %c0_i32_10 = arith.constant 0 : i32
    %11 = arith.cmpi eq, %arg3, %c0_i32_10 : i32
    %12 = arith.extui %11 : i1 to i32
    %c0_i32_11 = arith.constant 0 : i32
    %13 = arith.cmpi ne, %12, %c0_i32_11 : i32
    scf.if %13 {
      %c0_12 = arith.constant 0 : index
      %c0_13 = arith.constant 0 : index
      %14 = vector.load %arg8[%c0_12, %c0_13] : memref<16x4xf32, #tpu.memory_space<vmem>>, vector<16x4xf32>
      %c0_14 = arith.constant 0 : index
      %c0_15 = arith.constant 0 : index
      %c0_16 = arith.constant 0 : index
      %15 = vector.load %arg6[%c0_14, %c0_15, %c0_16] : memref<1x1x4xf32, #tpu.memory_space<vmem>>, vector<1x1x4xf32>
      %16 = vector.shape_cast %15 : vector<1x1x4xf32> to vector<1x4xf32>
      %17 = vector.broadcast %16 : vector<1x4xf32> to vector<16x4xf32>
      %18 = arith.addf %14, %17 : vector<16x4xf32>
      %c0_17 = arith.constant 0 : index
      %c0_18 = arith.constant 0 : index
      %c0_19 = arith.constant 0 : index
      %19 = vector.load %arg7[%c0_17, %c0_18, %c0_19] : memref<1x16x4xf32, #tpu.memory_space<vmem>>, vector<1x16x4xf32>
      %20 = vector.shape_cast %19 : vector<1x16x4xf32> to vector<16x4xf32>
      %21 = vector.shape_cast %18 : vector<16x4xf32> to vector<1x16x4xf32>
      tpu.vector_store %arg7[%c0_17, %c0_18, %c0_19], %21 {strides = array<i32>} : memref<1x16x4xf32, #tpu.memory_space<vmem>>, vector<1x16x4xf32>,
    } else {
    }
    return
  }
  func.func @transform_0(%arg0: i32, %arg1: i32, %arg2: i32, %arg3: i32) -> (i32, i32, i32) {
    %c0_i32 = arith.constant 0 : i32
    return %arg0, %arg1, %arg3 : i32, i32, i32
  }
  func.func @transform_1(%arg0: i32, %arg1: i32, %arg2: i32, %arg3: i32) -> (i32, i32, i32) {
    %c0_i32 = arith.constant 0 : i32
    return %arg0, %arg3, %arg2 : i32, i32, i32
  }
  func.func @transform_2(%arg0: i32, %arg1: i32, %arg2: i32, %arg3: i32) -> (i32, i32, i32) {
    %c0_i32 = arith.constant 0 : i32
    %c0_i32_0 = arith.constant 0 : i32
    return %arg0, %c0_i32, %arg2 : i32, i32, i32
  }
  func.func @transform_3(%arg0: i32, %arg1: i32, %arg2: i32, %arg3: i32) -> (i32, i32, i32) {
    %c0_i32 = arith.constant 0 : i32
    return %arg0, %arg1, %arg2 : i32, i32, i32
  }
}

</mosaic_0001>

<bundles_post_ra>
// kernel: tpu_custom_call.1
= control target key start
LH: loop header
LB: loop body
LE: loop exit
PB: predicated region body
PF: predicated region fallthrough
CT: control target
= control target key end

     0   :  { %s657_s12 = smov 0   ;;  %s659_s13 = smov 0   ;;  %s704_s0 = inlined_call_operand.vmem [shape: f32[3,16,4], index: 0, kind: input, shape index: {}]   ;;  %s705_s1 = inlined_call_operand.vmem [shape: f32[3,4,4], index: 1, kind: input, shape index: {}]   ;;  %s706_s2 = inlined_call_operand.vmem [shape: f32[3,1,4], index: 2, kind: input, shape index: {}]   ;;  %s707_s3 = inlined_call_operand.vmem [shape: f32[3,16,4], index: 3, kind: output, shape index: {}]  }
   0x1   :  { %s661_s14 = smov 0  }
   0x2 LB: > { %s39_s15 = sadd.s32 1, %s630_s13  ;;  %p565_p0 = scmp.ge.s32.totalorder %s634_s14, 1  ;;  %s634_s14 = sphi %s661_s14, %s13_s14   ;;  %s630_s13 = sphi %s659_s13, %s709_s13   ;;  %s626_s12 = sphi %s657_s12, %s708_s12  }
   0x3   : > { %p41_p1 = scmp.ge.s32.totalorder %s39_s15, 3  ;;  %p211_p2 = scmp.lt.s32.totalorder %s634_s14, 4 }
   0x5   : > { %s711_s15 = smov (%p41_p1, %s39_s15), 0  ;;  %p212_p3 = pnand %p565_p0, %p211_p2 }
   0x6   : > { %p266_p4 = scmp.lt.s32.totalorder (!%p212_p3), %s626_s12, 2  ;;  %vm311_vm0 = vcmask (!%p212_p3), 31744   ;;  %v636_v0 = vmov (!%p212_p3), 0.0   ;;  %vm326_vm1 = vcmask (!%p212_p3), 1043456  }
   0x7   : > { %215 = sbr.rel (%p212_p3) target bundleno = 246 (0xf6), region = 32  ;;  %313 = vst.msk [vmem:[#allocation2 + $0x8] sm:$0xff] (!%p212_p3), %vm311_vm0, %v636_v0  ;;  %312 = vst.msk [vmem:[#allocation2] sm:$0xff] (!%p212_p3), %vm311_vm0, %v636_v0 }
   0xe   : > { %s713_s12 = smov (!%p266_p4, %s626_s12), 2  ;;  %v315_v4 = vld [vmem:[#allocation2 + $0x8] sm:$0xff]  ;;  %v314_v5 = vld [vmem:[#allocation2] sm:$0xff] }
   0xf   : > { %s568_s16 = sshll.u32 %s713_s12, 2  ;;  %s577_s20 = sshll.u32 %s713_s12, 4 }
  0x10   : > { %s287_s19 = scalar_lea.vmem %s705_s1, %s568_s16  ;;  %s276_s23 = scalar_lea.vmem %s704_s0, %s577_s20 }
  0x11   : > { %v318_v1 = vld [vmem:[%s287_s19] sm:$0xf]  ;;  %v317_v3 = vld [vmem:[%s276_s23 + $0x8] sm:$0xff]  ;;  %s293_s26 = scalar_lea.vmem %s706_s2, %s713_s12  ;;  %s305_s29 = scalar_lea.vmem %s707_s3, %s577_s20 }
  0x12   : > { %582 = vmatprep.subr.msk.mxu0 %vm326_vm1, %v318_v1  ;;  %v316_v2 = vld [vmem:[%s276_s23] sm:$0xff] }
  0x13   : > { %583 = vmatpush3.msk.msra.mxu0 %vm326_vm1, %v318_v1  ;;  %584 = vmatprep.mubr.msk.f32.mxu0 %vm311_vm0, %v316_v2  ;;  %v574_v10 = vld [vmem:[%s293_s26] ss:$0 sm:$0xff] }
  0x14   : > { %585 = vmatmul.mubr.msk.f32.vlgmr.msra.gmra.mrb[0].mxu0 %vm311_vm0, %v317_v3 }
  0xe7   : > { %v586_v6 = vpop.f32.mrb[0].mxu0 }
  0xe8   : > { %v406_v7 = vadd.f32 %v586_v6, %v315_v4  ;;  %v396_v8 = vpop.f32.mrb[1].mxu0 }
  0xe9   : > { %v405_v9 = vadd.f32 %v396_v8, %v314_v5 }
  0xea   : > { %408 = vst.msk [vmem:[#allocation2 + $0x8] sm:$0xff] %vm311_vm0, %v406_v7 }
  0xeb   : > { %407 = vst.msk [vmem:[#allocation2] sm:$0xff] %vm311_vm0, %v405_v9 }
  0xf1   : > { %v413_v11 = vld [vmem:[#allocation2 + $0x8] sm:$0xff] }
  0xf2   : > { %v422_v12 = vadd.f32 %v574_v10, %v413_v11  ;;  %v412_v13 = vld [vmem:[#allocation2] sm:$0xff] }
  0xf3   : > { %v421_v14 = vadd.f32 %v574_v10, %v412_v13 }
  0xf4   : > { %424 = vst.msk [vmem:[%s305_s29 + $0x8] sm:$0xff] %vm311_vm0, %v422_v12 }
  0xf5   : > { %423 = vst.msk [vmem:[%s305_s29] sm:$0xff] %vm311_vm0, %v421_v14 }
  0xf6 PF: > { %s13_s14 = sadd.s32 1, %s634_s14   ;;  %s708_s12 = smov %s630_s13 }
  0xf7   : > { %p10_p5 = scmp.ge.s32.totalorder %s13_s14, 5   ;;  %s709_s13 = smov %s711_s15 }
  0xf9   :  { %12 = sbr.rel (!%p10_p5) target bundleno = 2 (0x2), region = 76 }

</bundles_post_ra>
